<compile_context>
chip_gen: v6e
topology: v6e:2x2x1
jax: 0.10.0
libtpu: 0.0.40
codegen_flags: <defaults>
</compile_context>

<pallas_src>
import math

import jax
import jax.numpy as jnp
from jax.experimental import pallas as pl
from jax.experimental.pallas import tpu as pltpu


def make_fixed_table(c_in: int, d_model: int) -> jnp.ndarray:
    """Deterministic sinusoidal table, matching the PyTorch __init__."""
    position = jnp.arange(c_in, dtype=jnp.float32)[:, None]                      # (c_in, 1)
    div_term = jnp.exp(
        jnp.arange(0, d_model, 2, dtype=jnp.float32) * -(math.log(10000.0) / d_model)
    )                                                                            # (ceil(d/2),)
    w = jnp.zeros((c_in, d_model), dtype=jnp.float32)
    w = w.at[:, 0::2].set(jnp.sin(position * div_term))
    w = w.at[:, 1::2].set(jnp.cos(position * div_term[: d_model // 2]))
    return w


# ---------------------------------------------------------------------------
# Kernel
# ---------------------------------------------------------------------------
def _fixed_embedding_kernel(idx_ref, w_ref, out_ref):
    # idx_ref: (tile_rows, fold) int32, column j pre-shifted by j*c_in so it
    #          addresses band j of the block-diagonal folded table.
    # w_ref:   (fold*c_in, lane_w) folded table (resident in VMEM).
    # out_ref: (tile_rows, lane_w) lane-dense output slab.
    idx = idx_ref[...]
    tile_rows, fold = idx.shape
    k_total = w_ref.shape[0]

    k_iota = jax.lax.broadcasted_iota(jnp.int32, (tile_rows, k_total), 1)
    # Bands are disjoint, so OR-accumulate boolean hits and cast once
    # (saves fold-1 converts + fold-1 f32 adds vs the per-band add version).
    hit = idx[:, 0:1] == k_iota
    for j in range(1, fold):               # static unroll; fold is small (<= 64, capped)
        hit = jnp.logical_or(hit, idx[:, j:j + 1] == k_iota)
    sel = hit.astype(w_ref.dtype)

    # Exact gather: multi-hot selector @ folded block-diagonal table (MXU, f32 acc).
    out_ref[...] = jnp.dot(
        sel, w_ref[...], preferred_element_type=jnp.float32
    ).astype(out_ref.dtype)


# ---------------------------------------------------------------------------
# Wrapper helpers
# ---------------------------------------------------------------------------
def _round_up(x: int, m: int) -> int:
    return ((x + m - 1) // m) * m


def _num_tensorcores() -> int:
    """2 for megacore / dual-TC chips (v7x, v4, v5p), else 1."""
    try:
        kind = jax.devices()[0].device_kind.lower()
    except Exception:
        return 1
    for tag in ("v7", "v4", "v5p"):
        if tag in kind:
            return 2
    return 1


def _choose_layout(c_in: int, d_model: int, max_selector_k: int = 1024):
    """Pick (fold, lane_w, d_pad) so the output last dim is a multiple of 128
    (unmasked vst) whenever possible.  lane_w = fold * d_pad."""
    if d_model % 128 == 0:
        return 1, d_model, d_model                      # already lane-dense
    if 128 % d_model == 0:
        fold = 128 // d_model                           # pack 128//d_model tokens per row
        while fold > 1 and fold * c_in > max_selector_k:
            fold //= 2                                  # cap selector width for tiny d_model
        return fold, fold * d_model, d_model
    # d_model not a divisor/multiple of 128 (e.g. 96, 192): try lcm folding.
    g = math.gcd(d_model, 128)
    fold = 128 // g
    if fold * d_model <= 1024 and fold * c_in <= max_selector_k:
        return fold, fold * d_model, d_model
    # Fallback: zero-pad the lane dim to the next multiple of 128 (stores stay
    # unmasked); the wrapper slices the pad columns off.
    d_pad = _round_up(d_model, 128)
    return 1, d_pad, d_pad


def _pick_tiling(rows_needed: int, tile_rows_cap: int, n_cores: int):
    """Returns (tile_rows, grid, rows_alloc)."""
    rows8 = _round_up(max(rows_needed, 1), 8)
    if n_cores <= 1 or rows8 <= 8:
        # Single TensorCore: largest tile, minimal (multiple-of-8) padding,
        # ragged last block handled by Pallas write masking.
        tile = min(tile_rows_cap, rows8)
        grid = pl.cdiv(rows8, tile)
        rows_alloc = rows8
    else:
        # Megacore: even grid >= 2 so both TensorCores get balanced work.
        grid = max(2, _round_up(pl.cdiv(rows8, tile_rows_cap), 2))
        tile = _round_up(pl.cdiv(rows8, grid), 8)
        rows_alloc = grid * tile                        # every block fully in-bounds
    return tile, grid, rows_alloc


# ---------------------------------------------------------------------------
# Public entry point
# ---------------------------------------------------------------------------
def fixed_embedding(
    x: jnp.ndarray,
    w: jnp.ndarray,
    *,
    tile_rows_max: int = 8192,
    out_dtype=jnp.float32,
) -> jnp.ndarray:
    """x: (B, L) integer indices in [0, c_in); w: (c_in, d_model) f32 table.
    Returns (B, L, d_model) rows of w (exact for out_dtype=float32, like
    nn.Embedding).  out_dtype=bfloat16 is an opt-in fast path (single-pass MXU,
    half the write bytes) with bf16-rounded table values."""
    B, L = x.shape
    c_in, d_model = w.shape
    N = B * L

    fold, lane_w, d_pad = _choose_layout(c_in, d_model)
    k_total = fold * c_in
    out_itemsize = jnp.dtype(out_dtype).itemsize

    # Row-tile cap: biggest tile within an ~8 MiB per-buffer output budget.
    budget_rows = max(8, ((8 * 1024 * 1024) // (lane_w * out_itemsize)) // 8 * 8)
    tile_cap = max(8, (min(tile_rows_max, budget_rows) // 8) * 8)

    rows_needed = pl.cdiv(N, fold)
    n_cores = _num_tensorcores()
    tile_rows, grid, rows_alloc = _pick_tiling(rows_needed, tile_cap, n_cores)

    # Indices: flatten, pad with 0 (valid row; padded outputs sliced off below),
    # fold to (rows_alloc, fold), and pre-shift column j by j*c_in.
    idx = x.reshape(N).astype(jnp.int32)
    idx = jnp.pad(idx, (0, rows_alloc * fold - N))
    idx = idx.reshape(rows_alloc, fold) + (jnp.arange(fold, dtype=jnp.int32) * c_in)[None, :]

    # Folded block-diagonal table: row j*c_in + c holds w[c] at lanes
    # [j*d_pad, j*d_pad + d_model), zeros elsewhere.
    w = w.astype(out_dtype)
    if fold == 1 and d_pad == d_model:
        w_big = w
    else:
        w_big = jnp.zeros((k_total, lane_w), out_dtype)
        for j in range(fold):
            w_big = w_big.at[j * c_in:(j + 1) * c_in, j * d_pad:j * d_pad + d_model].set(w)

    # VMEM budget from actual buffer sizes (x2 for double buffering) + margin.
    out_tile_bytes = tile_rows * lane_w * out_itemsize
    idx_tile_bytes = tile_rows * fold * 4
    tbl_bytes = k_total * lane_w * out_itemsize
    vmem_bytes = int(min(max(2 * (out_tile_bytes + idx_tile_bytes + tbl_bytes) + (4 << 20),
                             16 << 20), 64 << 20))

    cost = pl.CostEstimate(
        flops=2 * grid * tile_rows * k_total * lane_w,
        transcendentals=0,
        bytes_accessed=int(rows_alloc * lane_w * out_itemsize
                           + rows_alloc * fold * 4
                           + grid * k_total * lane_w * out_itemsize),
    )

    out_folded = pl.pallas_call(
        _fixed_embedding_kernel,
        out_shape=jax.ShapeDtypeStruct((rows_alloc, lane_w), out_dtype),
        grid_spec=pltpu.PrefetchScalarGridSpec(
            num_scalar_prefetch=0,
            grid=(grid,),
            in_specs=[
                pl.BlockSpec((tile_rows, fold), lambda i: (i, 0)),     # index tile
                pl.BlockSpec((k_total, lane_w), lambda i: (0, 0)),     # resident folded table
            ],
            out_specs=pl.BlockSpec((tile_rows, lane_w), lambda i: (i, 0)),
        ),
        compiler_params=pltpu.CompilerParams(
            dimension_semantics=("parallel",),
            vmem_limit_bytes=vmem_bytes,
        ),
        cost_estimate=cost,
    )(idx, w_big)

    # Unfold: row-major (rows_alloc, fold*d_pad) is (rows_alloc*fold, d_pad) row-major
    # (free reshape).  Column/row slices below are identities when shapes align
    # (no padding); otherwise a single bounded copy — consumers that care can take
    # the padded buffer directly.
    out = out_folded.reshape(rows_alloc * fold, d_pad)
    if d_pad != d_model:
        out = out[:, :d_model]
    if rows_alloc * fold != N:
        out = out[:N]
    return out.reshape(B, L, d_model)


# ---------------------------------------------------------------------------
# Self-test
# ---------------------------------------------------------------------------
if __name__ == "__main__":
    # Config 1: tiny temporal vocab, small d_model (fold = 4 lane-packing path).
    c_in, d_model = 8, 32
    B, L = 2, 8
    w = make_fixed_table(c_in, d_model)
    x = jax.random.randint(jax.random.PRNGKey(0), (B, L), 0, c_in, dtype=jnp.int32)
    out = jax.block_until_ready(fixed_embedding(x, w))
    assert out.shape == (B, L, d_model)
    assert jnp.allclose(out, w[x], atol=1e-6), "mismatch vs reference gather (config 1)"

    # Config 2: non-multiple-of-fold token count -> padding / remainder handling.
    B2, L2 = 3, 37
    x2 = jax.random.randint(jax.random.PRNGKey(1), (B2, L2), 0, c_in, dtype=jnp.int32)
    out2 = jax.block_until_ready(fixed_embedding(x2, w))
    assert out2.shape == (B2, L2, d_model)
    assert jnp.allclose(out2, w[x2], atol=1e-6), "mismatch vs reference gather (config 2)"

    # Config 3: same data with a small tile cap -> multi-step grid (and, on
    # single-TC chips, a ragged masked last block).
    out3 = jax.block_until_ready(fixed_embedding(x2, w, tile_rows_max=24))
    assert jnp.allclose(out3, w[x2], atol=1e-6), "mismatch vs reference gather (config 3)"

    # Config 4: d_model already a multiple of 128 (fold = 1 lane-dense path).
    c_in4, d_model4 = 16, 256
    w4 = make_fixed_table(c_in4, d_model4)
    B4, L4 = 2, 24
    x4 = jax.random.randint(jax.random.PRNGKey(2), (B4, L4), 0, c_in4, dtype=jnp.int32)
    out4 = jax.block_until_ready(fixed_embedding(x4, w4))
    assert out4.shape == (B4, L4, d_model4)
    assert jnp.allclose(out4, w4[x4], atol=1e-6), "mismatch vs reference gather (config 4)"

    print("KERNEL_OK")
</pallas_src>

<mosaic_0001>
module attributes {stable_mosaic.version = 11 : i64} {
  func.func @_fixed_embedding_kernel(%arg0: i32, %arg1: memref<8x4xi32, #tpu.memory_space<vmem>>, %arg2: memref<32x128xf32, #tpu.memory_space<vmem>>, %arg3: memref<8x128xf32, #tpu.memory_space<vmem>>) attributes {dimension_semantics = [#tpu.dimension_semantics<parallel>], iteration_bounds = array<i64: 1>, scalar_prefetch = 0 : i64, scratch_operands = 0 : i64, tpu.core_type = #tpu.core_type<tc>, window_params = [{transform_indices = @transform_0, window_bounds = array<i64: 8, 4>}, {pipeline_mode = #tpu.pipeline_mode<synchronous>, transform_indices = @transform_1, window_bounds = array<i64: 32, 128>}, {transform_indices = @transform_2, window_bounds = array<i64: 8, 128>}]} {
    %c0 = arith.constant 0 : index
    %c0_0 = arith.constant 0 : index
    %0 = vector.load %arg1[%c0, %c0_0] : memref<8x4xi32, #tpu.memory_space<vmem>>, vector<8x4xi32>
    %1 = tpu.iota {dimensions = array<i32: 1>} : vector<8x32xi32>
    %2 = vector.extract_strided_slice %0 {offsets = [0, 0], sizes = [8, 1], strides = [1, 1]} : vector<8x4xi32> to vector<8x1xi32>
    %3 = vector.broadcast %2 : vector<8x1xi32> to vector<8x32xi32>
    %4 = arith.cmpi eq, %3, %1 : vector<8x32xi32>
    %5 = vector.extract_strided_slice %0 {offsets = [0, 1], sizes = [8, 1], strides = [1, 1]} : vector<8x4xi32> to vector<8x1xi32>
    %6 = vector.broadcast %5 : vector<8x1xi32> to vector<8x32xi32>
    %7 = arith.cmpi eq, %6, %1 : vector<8x32xi32>
    %8 = arith.ori %4, %7 : vector<8x32xi1>
    %9 = vector.extract_strided_slice %0 {offsets = [0, 2], sizes = [8, 1], strides = [1, 1]} : vector<8x4xi32> to vector<8x1xi32>
    %10 = vector.broadcast %9 : vector<8x1xi32> to vector<8x32xi32>
    %11 = arith.cmpi eq, %10, %1 : vector<8x32xi32>
    %12 = arith.ori %8, %11 : vector<8x32xi1>
    %13 = vector.extract_strided_slice %0 {offsets = [0, 3], sizes = [8, 1], strides = [1, 1]} : vector<8x4xi32> to vector<8x1xi32>
    %14 = vector.broadcast %13 : vector<8x1xi32> to vector<8x32xi32>
    %15 = arith.cmpi eq, %14, %1 : vector<8x32xi32>
    %16 = arith.ori %12, %15 : vector<8x32xi1>
    %17 = arith.extui %16 : vector<8x32xi1> to vector<8x32xi32>
    %18 = arith.sitofp %17 : vector<8x32xi32> to vector<8x32xf32>
    %c0_1 = arith.constant 0 : index
    %c0_2 = arith.constant 0 : index
    %19 = vector.load %arg2[%c0_1, %c0_2] : memref<32x128xf32, #tpu.memory_space<vmem>>, vector<32x128xf32>
    %cst = arith.constant dense<0.000000e+00> : vector<8x128xf32>
    %20 = tpu.matmul %18, %19, %cst {dimension_numbers = #tpu.dot_dimension_numbers<[1], [0], [0], [1], [0, 0, 1, 1], [], []>} : vector<8x32xf32>, vector<32x128xf32>, vector<8x128xf32> -> vector<8x128xf32>
    %c0_3 = arith.constant 0 : index
    %c0_4 = arith.constant 0 : index
    %21 = vector.load %arg3[%c0_3, %c0_4] : memref<8x128xf32, #tpu.memory_space<vmem>>, vector<8x128xf32>
    tpu.vector_store %arg3[%c0_3, %c0_4], %20 {strides = array<i32>} : memref<8x128xf32, #tpu.memory_space<vmem>>, vector<8x128xf32>,
    return
  }
  func.func @transform_0(%arg0: i32) -> (i32, i32) {
    %c0_i32 = arith.constant 0 : i32
    %c0_i32_0 = arith.constant 0 : i32
    return %arg0, %c0_i32 : i32, i32
  }
  func.func @transform_1(%arg0: i32) -> (i32, i32) {
    %c0_i32 = arith.constant 0 : i32
    %c0_i32_0 = arith.constant 0 : i32
    %c0_i32_1 = arith.constant 0 : i32
    return %c0_i32, %c0_i32_0 : i32, i32
  }
  func.func @transform_2(%arg0: i32) -> (i32, i32) {
    %c0_i32 = arith.constant 0 : i32
    %c0_i32_0 = arith.constant 0 : i32
    return %arg0, %c0_i32 : i32, i32
  }
}

</mosaic_0001>

<bundles_post_ra>
// kernel: tpu_custom_call.1
= control target key start
LH: loop header
LB: loop body
LE: loop exit
PB: predicated region body
PF: predicated region fallthrough
CT: control target
= control target key end

     0   :  { %7 = vsyncpa [#allocation3], 0  ;;  %s255_s0 = inlined_call_operand.vmem [shape: s32[8,4], index: 0, kind: input, shape index: {}]   ;;  %s256_s1 = inlined_call_operand.hbm [shape: f32[32,128], index: 1, kind: input, shape index: {}]   ;;  %s257_s2 = inlined_call_operand.hbm [shape: f32[8,128], index: 2, kind: output, shape index: {}]  }
   0x1   :  { %8 = vsyncpa [#allocation4], 0  ;;  %s221_s9 = smov [#allocation2]  }
   0x2   :  { %s16_s10 = sshll.u32 %s221_s9, 4  ;;  %s17_s10 = int_to_ptr.vmem [resolvable:$true] %s16_s10 }
   0x3   :  { %s185_s11 = scalar_lea.vmem %s17_s10, 512  ;;  %p190_p1 = scmp.lt.s32.totalorder %s17_s10, %s17_s10 }
   0x4   :  { %p186_p0 = scmp.ne.s32.totalorder %s17_s10, %s185_s11  ;;  %p191_p2 = scmp.lt.s32.totalorder %s185_s11, %s185_s11 }
   0x6   :  { %p192_p3 = por %p191_p2, %p190_p1 }
   0x8   :  { %p193_p4 = pnand %p192_p3, %p186_p0 }
   0xa   :  { %196 = shalt.err (!%p193_p4)
}
   0xb   :  { %s222_s12 = smov 128   ;;  %s223_s13 = smov 8  }
   0xc   :  { %22 = dma.hbm_to_vmem [thread:$0]  %s256_s1, 512, %s17_s10, [#allocation3], %s222_s12, %s222_s12, %s223_s13  }
   0xd   :  { %217 = dma.done.wait [#allocation3], 512  }
   0xe   :  { %218 = vsyncadd [#allocation3], 4294966784  ;;  %v224_v0 = vmov 0   ;;  %v225_v1 = vmov 2   ;;  %v226_v2 = vmov 0.0   ;;  %v26_v3 = vld [vmem:[%s255_s0] sm:$0xff]  ;;  %v27_v10 = vlaneseq }
   0xf   :  { %172 = vset.pattern.permute.xlu0 %v224_v0  ;;  %174 = vset.pattern.permute.xlu1 %v225_v1  ;;  %v53_v4 = vld [vmem:[#allocation2 + $0x18] sm:$0xff]  ;;  %v52_v5 = vld [vmem:[#allocation2 + $0x10] sm:$0xff]  ;;  %v227_v6 = vmov 1   ;;  %v228_v7 = vmov 3   ;;  %v51_v8 = vld [vmem:[#allocation2 + $0x8] sm:$0xff]  ;;  %vm229_vm0 = vmmov 0  }
  0x10   :  { %151 = vmatprep.subr.mxu0 %v226_v2  ;;  %30 = vperm.xlu0 %172, %v26_v3   ;;  %v50_v9 = vld [vmem:[#allocation2] sm:$0xff]  ;;  %v28_v13 = vand.u32 127, %v27_v10  ;;  %vm54_vm7 = vcmask 261120   ;;  %s230_s0 = smov [#allocation5]  }
  0x11   :  { %39 = vperm.xlu1 %174, %v26_v3   ;;  %152 = vmatpush3.msra.mxu0 %v53_v4  ;;  %s135_s1 = sshll.u32 %s230_s0, 4  ;;  %s136_s1 = int_to_ptr.vmem [resolvable:$true] %s135_s1 }
  0x12   :  { %153 = vmatprep.subr.mxu0 %v226_v2  ;;  %159 = vmatprep.mubr.msk.f32.mxu0 %vm229_vm0, %v226_v2  ;;  %s197_s18 = scalar_lea.vmem %s136_s1, 128  ;;  %p202_p6 = scmp.lt.s32.totalorder %s136_s1, %s136_s1 }
  0x13   :  { %154 = vmatpush3.msra.mxu0 %v52_v5  ;;  %p198_p5 = scmp.ne.s32.totalorder %s136_s1, %s197_s18  ;;  %p203_p7 = scmp.lt.s32.totalorder %s197_s18, %s197_s18 }
  0x14   :  { %173 = vset.pattern.permute.xlu0 %v227_v6  ;;  %155 = vmatprep.subr.mxu0 %v226_v2 }
  0x15   :  { %175 = vset.pattern.permute.xlu1 %v228_v7  ;;  %34 = vperm.xlu0 %173, %v26_v3   ;;  %p204_p8 = por %p203_p7, %p202_p6 }
  0x16   :  { %44 = vperm.xlu1 %175, %v26_v3   ;;  %156 = vmatpush3.msra.mxu0 %v51_v8 }
  0x17   :  { %157 = vmatprep.subr.mxu0 %v226_v2  ;;  %p205_p9 = pnand %p204_p8, %p198_p5 }
  0x18   :  { %158 = vmatpush3.msra.mxu0 %v50_v9 }
  0x19   :  { %176 = vset.pattern.permute.xlu0 %v228_v7 }
  0x8b   :  { %v31_v11 = vpop.permute.xlu0 %30 }
  0x8c   :  { %v40_v12 = vpop.permute.xlu1 %39  ;;  %vm32_vm1 = vcmp.eq.s32.totalorder %v31_v11, %v28_v13 }
  0x8d   :  { %vm41_vm4 = vcmp.eq.s32.totalorder %v40_v12, %v28_v13 }
  0x90   :  { %v35_v14 = vpop.permute.xlu0 %34 }
  0x91   :  { %v45_v15 = vpop.permute.xlu1 %44  ;;  %vm36_vm2 = vcmp.eq.s32.totalorder %v35_v14, %v28_v13 }
  0x92   :  { %vm46_vm3 = vcmp.eq.s32.totalorder %v45_v15, %v28_v13  ;;  %vm37_vm5 = vmor %vm32_vm1, %vm36_vm2 }
  0x93   :  { %vm42_vm6 = vmor %vm37_vm5, %vm41_vm4 }
  0x94   :  { %vm47_vm8 = vmor %vm42_vm6, %vm46_vm3 }
  0x95   :  { %v144_v16 = vsel %vm47_vm8, 1.0, %v226_v2 }
  0x96   :  { %160 = vmatmul.mubr.msk.f32.vlgmr.msra.gmra.mxu0 %vm54_vm7, %v144_v16 }
 0x156   :  { %v124_v17 = vpop.f32.mrf.mxu0 }
 0x157   :  { %128 = vst [vmem:[#allocation5] sm:$0xff] %v124_v17 }
 0x158   :  { %v161_v18 = vpop.f32.mrf.mxu0 }
 0x159   :  { %208 = shalt.err (!%p205_p9)
}
 0x15a   :  { %138 = dma.vmem_to_hbm [thread:$0]  %s136_s1, 128, %s257_s2, [#allocation4]  }
 0x15b   :  { %219 = dma.done.wait [#allocation4], 128  }
 0x15c   :  { %220 = vsyncadd [#allocation4], 4294967168 }
 0x15d   :  { %142 = vsyncpa [#allocation3], 1 }
 0x15e   :  { %143 = vsyncpa [#allocation4], 1 }

</bundles_post_ra>
